<compile_context>
chip_gen: v7x
topology: tpu7x:2x2x1
jax: 0.10.0
libtpu: 0.0.40
codegen_flags: <defaults>
</compile_context>

<pallas_src>
import functools

import jax
import jax.numpy as jnp
from jax.experimental import pallas as pl
from jax.experimental.pallas import tpu as pltpu

HIDDEN = 128          # fixed by the PyTorch module (nn.Linear(state, 128), ...)
LANE = 128            # lane width for the padded, lane-dense output
TM_MAX = 1024         # batch-tile cap (footprint at 1024 is only a few MiB)
NEG_BIG = -1e30       # folded into padded b3 lanes; must stay f32


# ---------------------------------------------------------------------------
# Kernel
# ---------------------------------------------------------------------------
def policy_mlp_kernel(x_ref, w1_ref, b1_ref, w2_ref, b2_ref, w3_ref, b3_ref,
                      o_ref):
    """One (TM, state) batch tile through the fused 3-layer MLP + softmax."""
    # f32 load, bf16 cast in-kernel (free VPU work; halves x HBM traffic vs a
    # separate wrapper-side cast pass).
    x = x_ref[...].astype(jnp.bfloat16)                           # (TM, S)

    # fc1 + relu  (bf16 operands -> MXU, f32 accumulation / elementwise)
    h1 = jnp.dot(x, w1_ref[...], preferred_element_type=jnp.float32) + b1_ref[...]
    h1 = jnp.maximum(h1, 0.0).astype(jnp.bfloat16)

    # fc2 + relu
    h2 = jnp.dot(h1, w2_ref[...], preferred_element_type=jnp.float32) + b2_ref[...]
    h2 = jnp.maximum(h2, 0.0).astype(jnp.bfloat16)

    # fc3 — padded action lanes get 0 @ W3_pad + NEG_BIG from the bias, so they
    # contribute exp(-inf) == 0 to the softmax (no per-step iota/where mask).
    logits = jnp.dot(h2, w3_ref[...], preferred_element_type=jnp.float32) + b3_ref[...]

    # numerically stable softmax over the last dim (exact reciprocal: one
    # divide per row keeps row sums == 1 to f32 precision)
    m = jnp.max(logits, axis=-1, keepdims=True)
    e = jnp.exp(logits - m)
    o_ref[...] = e / jnp.sum(e, axis=-1, keepdims=True)


# ---------------------------------------------------------------------------
# One-time parameter prep (hoisted out of the per-call path)
# ---------------------------------------------------------------------------
def prepare_params(params):
    """bf16 weight casts + lane padding of the output layer, done once.

    RL policies run forward() every environment step; keeping these casts/pads
    per-call would re-launch separate XLA passes over the weights each step.
    """
    w1, b1, w2, b2, w3, b3 = params
    A = w3.shape[1]
    A_pad = pl.cdiv(A, LANE) * LANE
    w3p = jnp.pad(w3, ((0, 0), (0, A_pad - A)))                       # zero cols
    b3p = jnp.pad(b3, ((0, 0), (0, A_pad - A)), constant_values=NEG_BIG)  # mask
    return (
        w1.astype(jnp.bfloat16), b1.astype(jnp.float32),
        w2.astype(jnp.bfloat16), b2.astype(jnp.float32),
        w3p.astype(jnp.bfloat16), b3p.astype(jnp.float32),   # b3 stays f32 (-1e30)
    )


def _round_up(n, m):
    return ((n + m - 1) // m) * m


def _choose_tm(batch, tm_max=TM_MAX):
    """Minimize grid steps; keep an even step count >= 2 for v7x when possible."""
    if batch <= 128:
        return max(8, _round_up(batch, 8))          # one tile covers the batch
    tm = _round_up(pl.cdiv(batch, 2), 128)          # two balanced tiles
    if tm <= tm_max:
        return tm
    # very large batch: cap the tile, round the step count up to an even number
    steps = _round_up(pl.cdiv(batch, tm_max), 2)
    return _round_up(pl.cdiv(batch, steps), 128)


def _resident_spec(shape):
    """Grid-invariant weight/bias block: stays in VMEM, single-buffered."""
    try:
        return pl.BlockSpec(shape, lambda i: (0, 0), pipeline_mode=pl.Buffered(1))
    except TypeError:  # older jax without pipeline_mode kwarg — default buffering
        return pl.BlockSpec(shape, lambda i: (0, 0))


# ---------------------------------------------------------------------------
# Forward wrapper
# ---------------------------------------------------------------------------
def policy_network_forward(x, prepped_params, *, action_size, tm=None):
    """x: (B, state_size) f32.  Returns (B, action_size) f32 action probabilities."""
    w1, b1, w2, b2, w3p, b3p = prepped_params
    B, S = x.shape
    H = w1.shape[1]
    A_pad = w3p.shape[1]
    if tm is None:
        tm = _choose_tm(B)
    grid = (pl.cdiv(B, tm),)                 # ragged last tile handled by Pallas

    cost = pl.CostEstimate(
        flops=2 * B * (S * H + H * H + H * A_pad),
        transcendentals=B * A_pad,
        bytes_accessed=(x.size * 4
                        + (w1.size + w2.size + w3p.size) * 2
                        + (b1.size + b2.size + b3p.size) * 4
                        + B * A_pad * 4),
    )

    out = pl.pallas_call(
        policy_mlp_kernel,
        out_shape=jax.ShapeDtypeStruct((B, A_pad), jnp.float32),
        grid=grid,
        in_specs=[
            pl.BlockSpec((tm, S), lambda i: (i, 0)),      # x: pipelined per step
            _resident_spec((S, H)), _resident_spec((1, H)),        # W1, b1
            _resident_spec((H, H)), _resident_spec((1, H)),        # W2, b2
            _resident_spec((H, A_pad)), _resident_spec((1, A_pad)),  # W3, b3 (padded)
        ],
        out_specs=pl.BlockSpec((tm, A_pad), lambda i: (i, 0)),
        compiler_params=pltpu.CompilerParams(
            dimension_semantics=("parallel",)),   # shard batch tiles over TCs (v7x)
        cost_estimate=cost,
    )(x, w1, b1, w2, b2, w3p, b3p)

    return out[:, :action_size]


# ---------------------------------------------------------------------------
# Init (mimics PyTorch nn.Linear default init: U(-1/sqrt(fan_in), +1/sqrt(fan_in)))
# ---------------------------------------------------------------------------
def init_params(key, state_size, action_size, hidden=HIDDEN):
    ks = jax.random.split(key, 6)

    def linear(kw, kb, fan_in, fan_out):
        bound = 1.0 / jnp.sqrt(jnp.float32(fan_in))
        w = jax.random.uniform(kw, (fan_in, fan_out), jnp.float32, -bound, bound)
        b = jax.random.uniform(kb, (1, fan_out), jnp.float32, -bound, bound)
        return w, b

    w1, b1 = linear(ks[0], ks[1], state_size, hidden)
    w2, b2 = linear(ks[2], ks[3], hidden, hidden)
    w3, b3 = linear(ks[4], ks[5], hidden, action_size)
    return (w1, b1, w2, b2, w3, b3)


if __name__ == "__main__":
    key = jax.random.PRNGKey(0)
    k_x, k_p = jax.random.split(key)

    # Batch not a multiple of the tile -> exercises the ragged last grid block.
    batch = 200
    state_size = 32
    action_size = 8

    x = jax.random.normal(k_x, (batch, state_size), dtype=jnp.float32)
    params = init_params(k_p, state_size, action_size)
    prepped = prepare_params(params)          # one-time: bf16 casts + lane padding

    fwd = jax.jit(policy_network_forward, static_argnames=("action_size", "tm"))
    probs = fwd(x, prepped, action_size=action_size)
    probs = jax.block_until_ready(probs)

    # sanity: rows of a softmax must sum to 1
    assert probs.shape == (batch, action_size)
    assert bool(jnp.allclose(jnp.sum(probs, axis=-1), 1.0, atol=1e-4))

    # reference: plain-JAX forward with matching bf16 operand rounding
    w1, b1, w2, b2, w3, b3 = params
    bf = lambda a: a.astype(jnp.bfloat16)
    h1 = jnp.maximum(jnp.dot(bf(x), bf(w1), preferred_element_type=jnp.float32) + b1, 0.0)
    h2 = jnp.maximum(jnp.dot(bf(h1), bf(w2), preferred_element_type=jnp.float32) + b2, 0.0)
    ref = jax.nn.softmax(jnp.dot(bf(h2), bf(w3), preferred_element_type=jnp.float32) + b3,
                         axis=-1)
    assert bool(jnp.allclose(probs, ref, atol=2e-3, rtol=2e-3))

    print("KERNEL_OK")
</pallas_src>

<mosaic_0001>
module attributes {stable_mosaic.version = 11 : i64} {
  func.func @policy_mlp_kernel(%arg0: i32, %arg1: memref<128x32xf32, #tpu.memory_space<vmem>>, %arg2: memref<32x128xbf16, #tpu.memory_space<vmem>>, %arg3: memref<1x128xf32, #tpu.memory_space<vmem>>, %arg4: memref<128x128xbf16, #tpu.memory_space<vmem>>, %arg5: memref<1x128xf32, #tpu.memory_space<vmem>>, %arg6: memref<128x128xbf16, #tpu.memory_space<vmem>>, %arg7: memref<1x128xf32, #tpu.memory_space<vmem>>, %arg8: memref<128x128xf32, #tpu.memory_space<vmem>>) attributes {dimension_semantics = [#tpu.dimension_semantics<parallel>], iteration_bounds = array<i64: 2>, scalar_prefetch = 0 : i64, scratch_operands = 0 : i64, tpu.core_type = #tpu.core_type<tc>, window_params = [{transform_indices = @transform_0, window_bounds = array<i64: 128, 32>}, {pipeline_mode = #tpu.pipeline_mode<synchronous>, transform_indices = @transform_1, window_bounds = array<i64: 32, 128>}, {pipeline_mode = #tpu.pipeline_mode<synchronous>, transform_indices = @transform_2, window_bounds = array<i64: 1, 128>}, {pipeline_mode = #tpu.pipeline_mode<synchronous>, transform_indices = @transform_3, window_bounds = array<i64: 128, 128>}, {pipeline_mode = #tpu.pipeline_mode<synchronous>, transform_indices = @transform_4, window_bounds = array<i64: 1, 128>}, {pipeline_mode = #tpu.pipeline_mode<synchronous>, transform_indices = @transform_5, window_bounds = array<i64: 128, 128>}, {pipeline_mode = #tpu.pipeline_mode<synchronous>, transform_indices = @transform_6, window_bounds = array<i64: 1, 128>}, {transform_indices = @transform_7, window_bounds = array<i64: 128, 128>}]} {
    %c0 = arith.constant 0 : index
    %c0_0 = arith.constant 0 : index
    %0 = vector.load %arg1[%c0, %c0_0] : memref<128x32xf32, #tpu.memory_space<vmem>>, vector<128x32xf32>
    %1 = arith.truncf %0 : vector<128x32xf32> to vector<128x32xbf16>
    %c0_1 = arith.constant 0 : index
    %c0_2 = arith.constant 0 : index
    %2 = vector.load %arg2[%c0_1, %c0_2] : memref<32x128xbf16, #tpu.memory_space<vmem>>, vector<32x128xbf16>
    %cst = arith.constant dense<0.000000e+00> : vector<128x128xf32>
    %3 = tpu.matmul %1, %2, %cst {dimension_numbers = #tpu.dot_dimension_numbers<[1], [0], [0], [1], [0, 0, 1, 1], [], []>} : vector<128x32xbf16>, vector<32x128xbf16>, vector<128x128xf32> -> vector<128x128xf32>
    %c0_3 = arith.constant 0 : index
    %c0_4 = arith.constant 0 : index
    %4 = vector.load %arg3[%c0_3, %c0_4] : memref<1x128xf32, #tpu.memory_space<vmem>>, vector<1x128xf32>
    %5 = vector.broadcast %4 : vector<1x128xf32> to vector<128x128xf32>
    %6 = arith.addf %3, %5 : vector<128x128xf32>
    %cst_5 = arith.constant 0.000000e+00 : f32
    %7 = vector.broadcast %cst_5 : f32 to vector<128x128xf32>
    %8 = arith.maximumf %6, %7 : vector<128x128xf32>
    %9 = arith.truncf %8 : vector<128x128xf32> to vector<128x128xbf16>
    %c0_6 = arith.constant 0 : index
    %c0_7 = arith.constant 0 : index
    %10 = vector.load %arg4[%c0_6, %c0_7] : memref<128x128xbf16, #tpu.memory_space<vmem>>, vector<128x128xbf16>
    %cst_8 = arith.constant dense<0.000000e+00> : vector<128x128xf32>
    %11 = tpu.matmul %9, %10, %cst_8 {dimension_numbers = #tpu.dot_dimension_numbers<[1], [0], [0], [1], [0, 0, 1, 1], [], []>} : vector<128x128xbf16>, vector<128x128xbf16>, vector<128x128xf32> -> vector<128x128xf32>
    %c0_9 = arith.constant 0 : index
    %c0_10 = arith.constant 0 : index
    %12 = vector.load %arg5[%c0_9, %c0_10] : memref<1x128xf32, #tpu.memory_space<vmem>>, vector<1x128xf32>
    %13 = vector.broadcast %12 : vector<1x128xf32> to vector<128x128xf32>
    %14 = arith.addf %11, %13 : vector<128x128xf32>
    %cst_11 = arith.constant 0.000000e+00 : f32
    %15 = vector.broadcast %cst_11 : f32 to vector<128x128xf32>
    %16 = arith.maximumf %14, %15 : vector<128x128xf32>
    %17 = arith.truncf %16 : vector<128x128xf32> to vector<128x128xbf16>
    %c0_12 = arith.constant 0 : index
    %c0_13 = arith.constant 0 : index
    %18 = vector.load %arg6[%c0_12, %c0_13] : memref<128x128xbf16, #tpu.memory_space<vmem>>, vector<128x128xbf16>
    %cst_14 = arith.constant dense<0.000000e+00> : vector<128x128xf32>
    %19 = tpu.matmul %17, %18, %cst_14 {dimension_numbers = #tpu.dot_dimension_numbers<[1], [0], [0], [1], [0, 0, 1, 1], [], []>} : vector<128x128xbf16>, vector<128x128xbf16>, vector<128x128xf32> -> vector<128x128xf32>
    %c0_15 = arith.constant 0 : index
    %c0_16 = arith.constant 0 : index
    %20 = vector.load %arg7[%c0_15, %c0_16] : memref<1x128xf32, #tpu.memory_space<vmem>>, vector<1x128xf32>
    %21 = vector.broadcast %20 : vector<1x128xf32> to vector<128x128xf32>
    %22 = arith.addf %19, %21 : vector<128x128xf32>
    %cst_17 = arith.constant dense<0xFF800000> : vector<128xf32>
    %23 = vector.multi_reduction <maximumf>, %22, %cst_17 [1] : vector<128x128xf32> to vector<128xf32>
    %24 = vector.shape_cast %23 : vector<128xf32> to vector<128x1xf32>
    %25 = vector.broadcast %24 : vector<128x1xf32> to vector<128x128xf32>
    %26 = arith.subf %22, %25 : vector<128x128xf32>
    %27 = math.exp %26 : vector<128x128xf32>
    %cst_18 = arith.constant dense<0.000000e+00> : vector<128xf32>
    %28 = vector.multi_reduction <add>, %27, %cst_18 [1] : vector<128x128xf32> to vector<128xf32>
    %29 = vector.shape_cast %28 : vector<128xf32> to vector<128x1xf32>
    %30 = vector.broadcast %29 : vector<128x1xf32> to vector<128x128xf32>
    %31 = arith.divf %27, %30 : vector<128x128xf32>
    %c0_19 = arith.constant 0 : index
    %c0_20 = arith.constant 0 : index
    %32 = vector.load %arg8[%c0_19, %c0_20] : memref<128x128xf32, #tpu.memory_space<vmem>>, vector<128x128xf32>
    tpu.vector_store %arg8[%c0_19, %c0_20], %31 {strides = array<i32>} : memref<128x128xf32, #tpu.memory_space<vmem>>, vector<128x128xf32>,
    return
  }
  func.func @transform_0(%arg0: i32) -> (i32, i32) {
    %c0_i32 = arith.constant 0 : i32
    %c0_i32_0 = arith.constant 0 : i32
    return %arg0, %c0_i32 : i32, i32
  }
  func.func @transform_1(%arg0: i32) -> (i32, i32) {
    %c0_i32 = arith.constant 0 : i32
    %c0_i32_0 = arith.constant 0 : i32
    %c0_i32_1 = arith.constant 0 : i32
    return %c0_i32, %c0_i32_0 : i32, i32
  }
  func.func @transform_2(%arg0: i32) -> (i32, i32) {
    %c0_i32 = arith.constant 0 : i32
    %c0_i32_0 = arith.constant 0 : i32
    %c0_i32_1 = arith.constant 0 : i32
    return %c0_i32, %c0_i32_0 : i32, i32
  }
  func.func @transform_3(%arg0: i32) -> (i32, i32) {
    %c0_i32 = arith.constant 0 : i32
    %c0_i32_0 = arith.constant 0 : i32
    %c0_i32_1 = arith.constant 0 : i32
    return %c0_i32, %c0_i32_0 : i32, i32
  }
  func.func @transform_4(%arg0: i32) -> (i32, i32) {
    %c0_i32 = arith.constant 0 : i32
    %c0_i32_0 = arith.constant 0 : i32
    %c0_i32_1 = arith.constant 0 : i32
    return %c0_i32, %c0_i32_0 : i32, i32
  }
  func.func @transform_5(%arg0: i32) -> (i32, i32) {
    %c0_i32 = arith.constant 0 : i32
    %c0_i32_0 = arith.constant 0 : i32
    %c0_i32_1 = arith.constant 0 : i32
    return %c0_i32, %c0_i32_0 : i32, i32
  }
  func.func @transform_6(%arg0: i32) -> (i32, i32) {
    %c0_i32 = arith.constant 0 : i32
    %c0_i32_0 = arith.constant 0 : i32
    %c0_i32_1 = arith.constant 0 : i32
    return %c0_i32, %c0_i32_0 : i32, i32
  }
  func.func @transform_7(%arg0: i32) -> (i32, i32) {
    %c0_i32 = arith.constant 0 : i32
    %c0_i32_0 = arith.constant 0 : i32
    return %arg0, %c0_i32 : i32, i32
  }
}

</mosaic_0001>

<bundles_post_ra>
// kernel: policy_network_forward.1
= control target key start
LH: loop header
LB: loop body
LE: loop exit
PB: predicated region body
PF: predicated region fallthrough
CT: control target
= control target key end

     0   :  { %s1769_s24 = smov 0   ;;  %s1771_s25 = smov 0   ;;  %s2110_s0 = inlined_call_operand.vmem [shape: f32[200,32], index: 0, kind: input, shape index: {}]   ;;  %s2111_s1 = inlined_call_operand.vmem [shape: bf16[32,128], index: 1, kind: input, shape index: {}]   ;;  %s2112_s2 = inlined_call_operand.vmem [shape: f32[1,128], index: 2, kind: input, shape index: {}]   ;;  %s2113_s3 = inlined_call_operand.vmem [shape: bf16[128,128], index: 3, kind: input, shape index: {}]   ;;  %s2114_s4 = inlined_call_operand.vmem [shape: f32[1,128], index: 4, kind: input, shape index: {}]   ;;  %s2115_s5 = inlined_call_operand.vmem [shape: bf16[128,128], index: 5, kind: input, shape index: {}]   ;;  %s2116_s6 = inlined_call_operand.vmem [shape: f32[1,128], index: 6, kind: input, shape index: {}]   ;;  %s2117_s7 = inlined_call_operand.vmem [shape: f32[200,128], index: 7, kind: output, shape index: {}]  }
   0x1   :  { %s1773_s26 = smov 0  }
   0x2 LB: > { %s1782_s27 = sadd.s32 4294967295, %s1695_s26   ;;  %s1784_s28 = sadd.s32 1, %s1695_s26   ;;  %s1695_s26 = sphi %s1773_s26, %s2124_s26   ;;  %s1691_s25 = sphi %s1771_s25, %s2123_s25   ;;  %s1687_s24 = sphi %s1769_s24, %s2122_s24  }
   0x3   : > { %s173_s29 = ssub.s32 %s1695_s26, %s1784_s28  ;;  %s176_s30 = sadd.s32 1, %s1691_s25 }
   0x4   : > { %p174_p0 = scmp.eq.s32.totalorder %s173_s29, 0  ;;  %p186_p1 = scmp.ne.s32.totalorder %s1691_s25, %s1687_s24 }
   0x5   : > { %p187_p2 = scmp.eq.s32.totalorder %s1782_s27, 1  ;;  %p1292_p3 = scmp.ge.s32.totalorder %s1695_s26, 1 }
   0x6   : > { %s1792_s8 = scalar_select %p174_p0, %s1691_s25, %s176_s30  }
   0x7   : > { %p1794_p4 = por %p187_p2, %p186_p1  ;;  %p246_p5 = scmp.lt.s32.totalorder %s1695_s26, 3 }
   0x9   : > { %p247_p6 = pnand %p1292_p3, %p246_p5 }
   0xa   : > { %v1559_v0 = vld [vmem:[%s2111_s1] sm:$0xff] (!%p247_p6)   ;;  %s1802_s12 = sshll.u32 (!%p247_p6), %s1782_s27, 4  ;;  %v1560_v1 = vld [vmem:[%s2111_s1 + $0x8] sm:$0xff] (!%p247_p6)   ;;  %v1563_v4 = vld [vmem:[%s2113_s3 + $0x10] sm:$0xff] (!%p247_p6)   ;;  %vm348_vm0 = vcmask (!%p247_p6), 261120   ;;  %s278_s30 = sand.u32 (!%p247_p6), 1, %s1687_s24  }
   0xb   : > { %250 = sbr.rel (%p247_p6) target bundleno = 1078 (0x436), region = 48  ;;  %p286_p7 = scmp.lt.s32.totalorder (!%p247_p6), %s1802_s12, 24  ;;  %1387 = vmatprep.subr.bf16.mxu0 (!%p247_p6), %v1559_v0  ;;  %v1561_v2 = vld [vmem:[%s2113_s3] sm:$0xff] (!%p247_p6)   ;;  %v1562_v3 = vld [vmem:[%s2113_s3 + $0x8] sm:$0xff] (!%p247_p6)   ;;  %v1564_v14 = vld [vmem:[%s2113_s3 + $0x18] sm:$0xff] (!%p247_p6)  }
   0xc   : > { %1388 = vmatpush3.bf16.msra.mxu0 (!%p247_p6), %v1559_v0  ;;  %1407 = vmatprep.subr.bf16.mxu1 (!%p247_p6), %v1561_v2  ;;  %v1565_v18 = vld [vmem:[%s2113_s3 + $0x20] sm:$0xff] (!%p247_p6)   ;;  %v1566_v22 = vld [vmem:[%s2113_s3 + $0x28] sm:$0xff] (!%p247_p6)   ;;  %v1567_v32 = vld [vmem:[%s2113_s3 + $0x30] sm:$0xff] (!%p247_p6)   ;;  %s1293_s10 = sshll.u32 (!%p247_p6), %s278_s30, 7 }
   0xd   : > { %1389 = vmatprep.subr.bf16.mxu0 (!%p247_p6), %v1560_v1  ;;  %1408 = vmatpush3.bf16.msra.mxu1 (!%p247_p6), %v1561_v2  ;;  %v1568_v33 = vld [vmem:[%s2113_s3 + $0x38] sm:$0xff] (!%p247_p6)   ;;  %v1569_v34 = vld [vmem:[%s2115_s5] sm:$0xff] (!%p247_p6)   ;;  %v1570_v35 = vld [vmem:[%s2115_s5 + $0x8] sm:$0xff] (!%p247_p6)   ;;  %s1977_s11 = scalar_lea.vmem (!%p247_p6), [#allocation2], %s1293_s10  }
   0xe   : > { %1409 = vmatprep.subr.bf16.mxu1 (!%p247_p6), %v1562_v3  ;;  %v1571_v36 = vld [vmem:[%s2115_s5 + $0x10] sm:$0xff] (!%p247_p6)   ;;  %v1572_v37 = vld [vmem:[%s2115_s5 + $0x18] sm:$0xff] (!%p247_p6)   ;;  %v1573_v38 = vld [vmem:[%s2115_s5 + $0x20] sm:$0xff] (!%p247_p6)  }
   0xf   : > { %v1574_v39 = vld [vmem:[%s2115_s5 + $0x28] sm:$0xff] (!%p247_p6)   ;;  %v1296_v40 = vld [vmem:[%s2112_s2] ss:$0 sm:$0xff] (!%p247_p6) }
  0x10   : > { %1390 = vmatpush3.bf16.msra.mxu0 (!%p247_p6), %v1560_v1 }
  0x11   : > { %1410 = vmatpush3.bf16.msra.mxu1 (!%p247_p6), %v1562_v3  ;;  %1439 = vmatprep.subr.bf16.mxu0 (!%p247_p6), %v1569_v34 }
  0x12   : > { %s287_s17 = scalar_select %p286_p7, %s1802_s12, 24  ;;  %1411 = vmatprep.subr.bf16.mxu1 %v1563_v4 }
  0x13   : > { %s1022_s24 = ssub.s32 (%p1794_p4), 25, %s1802_s12  ;;  %s1342_s13 = sshll.u32 (%p1794_p4), %s1782_s27, 7 }
  0x14   : > { %s1295_s20 = sshll.u32 %s287_s17, 3  ;;  %p1023_p8 = scmp.lt.s32.totalorder (%p1794_p4), %s1022_s24, 16 }
  0x15   : > { %s1818_s23 = scalar_lea.vmem %s2110_s0, %s1295_s20  ;;  %1412 = vmatpush3.bf16.msra.mxu1 %v1563_v4  ;;  %s2017_s16 = scalar_lea.vmem (%p1794_p4), %s2117_s7, %s1342_s13  }
  0x16   : > { %v301_v5 = vld [vmem:[%s1818_s23] sm:$0xff]  ;;  %v302_v6 = vld [vmem:[%s1818_s23 + $0x8] sm:$0xff]  ;;  %v303_v7 = vld [vmem:[%s1818_s23 + $0x10] sm:$0xff]  ;;  %1413 = vmatprep.subr.bf16.mxu1 %v1564_v14 }
  0x17   : > { %v317_v8 = vpack.c.bf16 %v302_v6, %v301_v5  ;;  %v304_v9 = vld [vmem:[%s1818_s23 + $0x18] sm:$0xff]  ;;  %v305_v10 = vld [vmem:[%s1818_s23 + $0x20] sm:$0xff]  ;;  %v306_v11 = vld [vmem:[%s1818_s23 + $0x28] sm:$0xff] }
  0x18   : > { %v318_v12 = vpack.c.bf16 %v304_v9, %v303_v7  ;;  %v319_v13 = vpack.c.bf16 %v306_v11, %v305_v10  ;;  %v307_v15 = vld [vmem:[%s1818_s23 + $0x30] sm:$0xff]  ;;  %v308_v16 = vld [vmem:[%s1818_s23 + $0x38] sm:$0xff]  ;;  %v309_v17 = vld [vmem:[%s1818_s23 + $0x40] sm:$0xff] }
  0x19   : > { %1391 = vmatprep.mubr.msk.bf16.mxu0 %vm348_vm0, %v317_v8  ;;  %v310_v19 = vld [vmem:[%s1818_s23 + $0x48] sm:$0xff]  ;;  %v320_v20 = vpack.c.bf16 %v308_v16, %v307_v15  ;;  %1414 = vmatpush3.bf16.msra.mxu1 %v1564_v14  ;;  %v311_v23 = vld [vmem:[%s1818_s23 + $0x50] sm:$0xff]  ;;  %v312_v24 = vld [vmem:[%s1818_s23 + $0x58] sm:$0xff] }
  0x1a   : > { %1392 = vmatmul.mubr.msk.bf16.vlgmr.msra.gmra.mrb[0].mxu0 %vm348_vm0, %v318_v12  ;;  %v321_v21 = vpack.c.bf16 %v310_v19, %v309_v17  ;;  %1415 = vmatprep.subr.bf16.mxu1 %v1565_v18  ;;  %v313_v25 = vld [vmem:[%s1818_s23 + $0x60] sm:$0xff]  ;;  %v314_v26 = vld [vmem:[%s1818_s23 + $0x68] sm:$0xff]  ;;  %v322_v27 = vpack.c.bf16 %v312_v24, %v311_v23  ;;  %v315_v29 = vld [vmem:[%s1818_s23 + $0x70] sm:$0xff] }
  0x1b   : > { %1395 = vmatprep.mubr.msk.bf16.mxu0 %vm348_vm0, %v319_v13  ;;  %v323_v28 = vpack.c.bf16 %v314_v26, %v313_v25  ;;  %v316_v30 = vld [vmem:[%s1818_s23 + $0x78] sm:$0xff]  ;;  %1440 = vmatpush3.bf16.msra.mxu0 %v1569_v34 }
  0x1c   : > { %v324_v31 = vpack.c.bf16 %v316_v30, %v315_v29  ;;  %1441 = vmatprep.subr.bf16.mxu0 %v1570_v35  ;;  %v1576_v34 = vld [vmem:[%s2115_s5 + $0x38] sm:$0xff]  }
  0x1d   : > { %1416 = vmatpush3.bf16.msra.mxu1 %v1565_v18 }
  0x1e   : > { %1417 = vmatprep.subr.bf16.mxu1 %v1566_v22 }
  0x1f   : > { %1442 = vmatpush3.bf16.msra.mxu0 %v1570_v35  ;;  %v1307_v35 = vld [vmem:[%s2114_s4] ss:$0 sm:$0xff] }
  0x20   : > { %1443 = vmatprep.subr.bf16.mxu0 %v1571_v36 }
  0x21   : > { %1418 = vmatpush3.bf16.msra.mxu1 %v1566_v22 }
  0x22   : > { %1396 = vmatmul.mubr.msk.bf16.gmra.mrb[4].mxu0 %vm348_vm0, %v320_v20  ;;  %1419 = vmatprep.subr.bf16.mxu1 %v1567_v32 }
  0x23   : > { %1399 = vmatprep.mubr.msk.bf16.mxu0 %vm348_vm0, %v321_v21  ;;  %1444 = vmatpush3.bf16.msra.mxu0 %v1571_v36 }
  0x24   : > { %1445 = vmatprep.subr.bf16.mxu0 %v1572_v37 }
  0x25   : > { %1420 = vmatpush3.bf16.msra.mxu1 %v1567_v32 }
  0x26   : > { %1421 = vmatprep.subr.bf16.mxu1 %v1568_v33 }
  0x27   : > { %1446 = vmatpush3.bf16.msra.mxu0 %v1572_v37 }
  0x28   : > { %1447 = vmatprep.subr.bf16.mxu0 %v1573_v38 }
  0x29   : > { %1422 = vmatpush3.bf16.msra.mxu1 %v1568_v33  ;;  %v1575_v33 = vld [vmem:[%s2115_s5 + $0x30] sm:$0xff]  }
  0x2a   : > { %1400 = vmatmul.mubr.msk.bf16.gmra.mrb[8].mxu0 %vm348_vm0, %v322_v27 }
  0x2b   : > { %1403 = vmatprep.mubr.msk.bf16.mxu0 %vm348_vm0, %v323_v28  ;;  %1448 = vmatpush3.bf16.msra.mxu0 %v1573_v38 }
  0x2c   : > { %1449 = vmatprep.subr.bf16.mxu0 %v1574_v39 }
  0x2f   : > { %1450 = vmatpush3.bf16.msra.mxu0 %v1574_v39 }
  0x30   : > { %1451 = vmatprep.subr.bf16.mxu0 %v1575_v33 }
  0x32   : > { %1404 = vmatmul.mubr.msk.bf16.gmra.mrb[12].mxu0 %vm348_vm0, %v324_v31 }
  0x33   : > { %1452 = vmatpush3.bf16.msra.mxu0 %v1575_v33 }
  0x34   : > { %1453 = vmatprep.subr.bf16.mxu0 %v1576_v34 }
  0x37   : > { %1454 = vmatpush3.bf16.msra.mxu0 %v1576_v34 }
  0xed   : > { %v1393_v41 = vpop.f32.mrb[0].mxu0 }
  0xee   : > { %v416_v42 = vadd.f32 %v1393_v41, %v1296_v40  ;;  %v407_v43 = vpop.f32.mrb[1].mxu0 }
  0xef   : > { %v408_v44 = vadd.f32 %v1296_v40, %v407_v43  ;;  %v1394_v45 = vpop.f32.mrb[2].mxu0 }
  0xf0   : > { %v419_v46 = vadd.f32 %v1394_v45, %v1296_v40  ;;  %v410_v47 = vpop.f32.mrb[3].mxu0  ;;  %v472_v49 = vmax.f32 %v416_v42, 0.0 }
  0xf1   : > { %v411_v48 = vadd.f32 %v1296_v40, %v410_v47  ;;  %v470_v51 = vmax.f32 %v408_v44, 0.0 }
  0xf2   : > { %v473_v50 = vmax.f32 %v419_v46, 0.0 }
  0xf3   : > { %v471_v52 = vmax.f32 %v411_v48, 0.0 }
  0xf4   : > { %v487_v53 = vpack.c.bf16 %v473_v50, %v472_v49 }
  0xf5   : > { %v1397_v54 = vpop.f32.mrb[4].mxu0  ;;  %v486_v55 = vpack.c.bf16 %v471_v52, %v470_v51 }
  0xf6   : > { %v432_v56 = vadd.f32 %v1397_v54, %v1296_v40  ;;  %v423_v57 = vpop.f32.mrb[5].mxu0 }
  0xf7   : > { %v424_v58 = vadd.f32 %v1296_v40, %v423_v57  ;;  %v1398_v59 = vpop.f32.mrb[6].mxu0  ;;  %1423 = vmatprep.mubr.bf16.mxu1 %v486_v55 }
  0xf8   : > { %v476_v60 = vmax.f32 %v432_v56, 0.0  ;;  %v435_v61 = vadd.f32 %v1398_v59, %v1296_v40  ;;  %v426_v62 = vpop.f32.mrb[7].mxu0  ;;  %1424 = vmatmul.mubr.bf16.vlgmr.msra.gmra.mrb[0].mxu1 %v487_v53 }
  0xf9   : > { %v427_v63 = vadd.f32 %v1296_v40, %v426_v62  ;;  %v474_v1 = vmax.f32 %v424_v58, 0.0 }
  0xfa   : > { %v477_v0 = vmax.f32 %v435_v61, 0.0 }
  0xfb   : > { %v475_v2 = vmax.f32 %v427_v63, 0.0 }
  0xfc   : > { %v489_v3 = vpack.c.bf16 %v477_v0, %v476_v60 }
  0xfd   : > { %v488_v4 = vpack.c.bf16 %v475_v2, %v474_v1  ;;  %v1401_v5 = vpop.f32.mrb[8].mxu0 }
  0xfe   : > { %v448_v6 = vadd.f32 %v1401_v5, %v1296_v40  ;;  %v439_v7 = vpop.f32.mrb[9].mxu0 }
  0xff   : > { %v440_v8 = vadd.f32 %v1296_v40, %v439_v7  ;;  %v1402_v9 = vpop.f32.mrb[10].mxu0  ;;  %1427 = vmatprep.mubr.bf16.mxu1 %v488_v4 }
 0x100   : > { %v480_v10 = vmax.f32 %v448_v6, 0.0  ;;  %v451_v11 = vadd.f32 %v1402_v9, %v1296_v40  ;;  %v442_v12 = vpop.f32.mrb[11].mxu0  ;;  %1428 = vmatmul.mubr.bf16.gmra.mrb[4].mxu1 %v489_v3 }
 0x101   : > { %v443_v13 = vadd.f32 %v1296_v40, %v442_v12  ;;  %v478_v15 = vmax.f32 %v440_v8, 0.0 }
 0x102   : > { %v481_v14 = vmax.f32 %v451_v11, 0.0 }
 0x103   : > { %v479_v16 = vmax.f32 %v443_v13, 0.0 }
 0x104   : > { %v491_v17 = vpack.c.bf16 %v481_v14, %v480_v10 }
 0x105   : > { %v490_v18 = vpack.c.bf16 %v479_v16, %v478_v15  ;;  %v1405_v19 = vpop.f32.mrb[12].mxu0 }
 0x106   : > { %v464_v20 = vadd.f32 %v1405_v19, %v1296_v40  ;;  %v455_v21 = vpop.f32.mrb[13].mxu0 }
 0x107   : > { %v456_v22 = vadd.f32 %v1296_v40, %v455_v21  ;;  %v1406_v23 = vpop.f32.mrb[14].mxu0  ;;  %1431 = vmatprep.mubr.bf16.mxu1 %v490_v18 }
 0x108   : > { %v484_v24 = vmax.f32 %v464_v20, 0.0  ;;  %v467_v25 = vadd.f32 %v1406_v23, %v1296_v40  ;;  %v458_v26 = vpop.f32.mrb[15].mxu0  ;;  %1432 = vmatmul.mubr.bf16.gmra.mrb[8].mxu1 %v491_v17 }
 0x109   : > { %v459_v27 = vadd.f32 %v1296_v40, %v458_v26  ;;  %v482_v29 = vmax.f32 %v456_v22, 0.0 }
 0x10a   : > { %v485_v28 = vmax.f32 %v467_v25, 0.0 }
 0x10b   : > { %v483_v30 = vmax.f32 %v459_v27, 0.0 }
 0x10c   : > { %v493_v31 = vpack.c.bf16 %v485_v28, %v484_v24  ;;  %v1316_v28 = vld [vmem:[%s2116_s6] ss:$0 sm:$0xff] }
 0x10d   : > { %v492_v32 = vpack.c.bf16 %v483_v30, %v482_v29 }
 0x10f   : > { %1435 = vmatprep.mubr.bf16.mxu1 %v492_v32 }
 0x110   : > { %1436 = vmatmul.mubr.bf16.gmra.mrb[12].mxu1 %v493_v31 }
 0x1cb   : > { %v1425_v36 = vpop.f32.mrb[0].mxu1 }
 0x1cc   : > { %v608_v37 = vadd.f32 %v1425_v36, %v1307_v35  ;;  %v599_v38 = vpop.f32.mrb[1].mxu1 }
 0x1cd   : > { %v600_v39 = vadd.f32 %v1307_v35, %v599_v38  ;;  %v1426_v40 = vpop.f32.mrb[2].mxu1 }
 0x1ce   : > { %v611_v41 = vadd.f32 %v1426_v40, %v1307_v35  ;;  %v602_v42 = vpop.f32.mrb[3].mxu1  ;;  %v664_v44 = vmax.f32 %v608_v37, 0.0 }
 0x1cf   : > { %v603_v43 = vadd.f32 %v1307_v35, %v602_v42  ;;  %v662_v46 = vmax.f32 %v600_v39, 0.0 }
 0x1d0   : > { %v665_v45 = vmax.f32 %v611_v41, 0.0 }
 0x1d1   : > { %v663_v47 = vmax.f32 %v603_v43, 0.0 }
 0x1d2   : > { %v679_v48 = vpack.c.bf16 %v665_v45, %v664_v44 }
 0x1d3   : > { %v678_v49 = vpack.c.bf16 %v663_v47, %v662_v46  ;;  %v1429_v50 = vpop.f32.mrb[4].mxu1 }
 0x1d4   : > { %v624_v51 = vadd.f32 %v1429_v50, %v1307_v35  ;;  %v615_v52 = vpop.f32.mrb[5].mxu1 }
 0x1d5   : > { %v616_v53 = vadd.f32 %v1307_v35, %v615_v52  ;;  %v1430_v54 = vpop.f32.mrb[6].mxu1  ;;  %1455 = vmatprep.mubr.bf16.mxu0 %v678_v49 }
 0x1d6   : > { %v627_v55 = vadd.f32 %v1430_v54, %v1307_v35  ;;  %v618_v56 = vpop.f32.mrb[7].mxu1  ;;  %1456 = vmatmul.mubr.bf16.vlgmr.msra.gmra.mrb[16].mxu0 %v679_v48  ;;  %v668_v58 = vmax.f32 %v624_v51, 0.0 }
 0x1d7   : > { %v619_v57 = vadd.f32 %v1307_v35, %v618_v56  ;;  %v666_v60 = vmax.f32 %v616_v53, 0.0 }
 0x1d8   : > { %v669_v59 = vmax.f32 %v627_v55, 0.0 }
 0x1d9   : > { %v667_v61 = vmax.f32 %v619_v57, 0.0 }
 0x1da   : > { %v681_v62 = vpack.c.bf16 %v669_v59, %v668_v58 }
 0x1db   : > { %v680_v63 = vpack.c.bf16 %v667_v61, %v666_v60  ;;  %v1433_v0 = vpop.f32.mrb[8].mxu1 }
 0x1dc   : > { %v640_v1 = vadd.f32 %v1433_v0, %v1307_v35  ;;  %v631_v2 = vpop.f32.mrb[9].mxu1 }
 0x1dd   : > { %v632_v3 = vadd.f32 %v1307_v35, %v631_v2  ;;  %v1434_v4 = vpop.f32.mrb[10].mxu1  ;;  %1459 = vmatprep.mubr.bf16.mxu0 %v680_v63 }
 0x1de   : > { %v643_v5 = vadd.f32 %v1434_v4, %v1307_v35  ;;  %v634_v6 = vpop.f32.mrb[11].mxu1  ;;  %1460 = vmatmul.mubr.bf16.gmra.mrb[20].mxu0 %v681_v62  ;;  %v672_v8 = vmax.f32 %v640_v1, 0.0 }
 0x1df   : > { %v635_v7 = vadd.f32 %v1307_v35, %v634_v6  ;;  %v670_v10 = vmax.f32 %v632_v3, 0.0 }
 0x1e0   : > { %v673_v9 = vmax.f32 %v643_v5, 0.0 }
 0x1e1   : > { %v671_v11 = vmax.f32 %v635_v7, 0.0 }
 0x1e2   : > { %v683_v12 = vpack.c.bf16 %v673_v9, %v672_v8 }
 0x1e3   : > { %v682_v13 = vpack.c.bf16 %v671_v11, %v670_v10  ;;  %v1437_v14 = vpop.f32.mrb[12].mxu1 }
 0x1e4   : > { %v656_v15 = vadd.f32 %v1437_v14, %v1307_v35  ;;  %v647_v16 = vpop.f32.mrb[13].mxu1 }
 0x1e5   : > { %v648_v17 = vadd.f32 %v1307_v35, %v647_v16  ;;  %v1438_v18 = vpop.f32.mrb[14].mxu1  ;;  %1463 = vmatprep.mubr.bf16.mxu0 %v682_v13 }
 0x1e6   : > { %v659_v19 = vadd.f32 %v1438_v18, %v1307_v35  ;;  %v650_v20 = vpop.f32.mrb[15].mxu1  ;;  %1464 = vmatmul.mubr.bf16.gmra.mrb[24].mxu0 %v683_v12  ;;  %v676_v22 = vmax.f32 %v656_v15, 0.0 }
 0x1e7   : > { %v651_v21 = vadd.f32 %v1307_v35, %v650_v20  ;;  %v674_v24 = vmax.f32 %v648_v17, 0.0 }
 0x1e8   : > { %v677_v23 = vmax.f32 %v659_v19, 0.0 }
 0x1e9   : > { %v675_v25 = vmax.f32 %v651_v21, 0.0 }
 0x1ea   : > { %v685_v26 = vpack.c.bf16 %v677_v23, %v676_v22 }
 0x1eb   : > { %v684_v27 = vpack.c.bf16 %v675_v25, %v674_v24 }
 0x1ed   : > { %1467 = vmatprep.mubr.bf16.mxu0 %v684_v27 }
 0x1ee   : > { %1468 = vmatmul.mubr.bf16.gmra.mrb[28].mxu0 %v685_v26 }
 0x2a9   : > { %v1457_v29 = vpop.f32.mrb[16].mxu0 }
 0x2aa   : > { %v800_v30 = vadd.f32 %v1457_v29, %v1316_v28  ;;  %v791_v31 = vpop.f32.mrb[17].mxu0 }
 0x2ab   : > { %v792_v32 = vadd.f32 %v1316_v28, %v791_v31  ;;  %v1458_v33 = vpop.f32.mrb[18].mxu0 }
 0x2ac   : > { %858 = vmax.xlane.f32.xlu1 %v800_v30  ;;  %v794_v34 = vpop.f32.mrb[19].mxu0  ;;  %v803_v35 = vadd.f32 %v1458_v33, %v1316_v28 }
 0x2ad   : > { %854 = vmax.xlane.f32.xlu0 %v792_v32  ;;  %v795_v36 = vadd.f32 %v1316_v28, %v794_v34 }
 0x2b0   : > { %860 = vmax.xlane.f32.xlu1 %v803_v35 }
 0x2b1   : > { %v1461_v37 = vpop.f32.mrb[20].mxu0  ;;  %856 = vmax.xlane.f32.xlu0 %v795_v36 }
 0x2b2   : > { %v816_v38 = vadd.f32 %v1461_v37, %v1316_v28  ;;  %v807_v39 = vpop.f32.mrb[21].mxu0 }
 0x2b3   : > { %v1462_v40 = vpop.f32.mrb[22].mxu0  ;;  %v808_v43 = vadd.f32 %v1316_v28, %v807_v39 }
 0x2b4   : > { %v819_v41 = vadd.f32 %v1462_v40, %v1316_v28  ;;  %v810_v42 = vpop.f32.mrb[23].mxu0 }
 0x2b5   : > { %866 = vmax.xlane.f32.xlu0 %v816_v38  ;;  %v811_v44 = vadd.f32 %v1316_v28, %v810_v42 }
 0x2b6   : > { %868 = vmax.xlane.f32.xlu1 %v819_v41 }
 0x2b9   : > { %v1465_v45 = vpop.f32.mrb[24].mxu0  ;;  %862 = vmax.xlane.f32.xlu0 %v808_v43 }
 0x2ba   : > { %v1895_v46 = vadd.f32 %v1465_v45, %v1316_v28  ;;  %v823_v47 = vpop.f32.mrb[25].mxu0  ;;  %864 = vmax.xlane.f32.xlu1 %v811_v44 }
 0x2bb   : > { %v1466_v48 = vpop.f32.mrb[26].mxu0  ;;  %v1901_v51 = vadd.f32 %v1316_v28, %v823_v47 }
 0x2bc   : > { %v1897_v49 = vadd.f32 %v1466_v48, %v1316_v28  ;;  %v826_v50 = vpop.f32.mrb[27].mxu0 }
 0x2bd   : > { %874 = vmax.xlane.f32.xlu0 %v1895_v46  ;;  %v1903_v52 = vadd.f32 %v1316_v28, %v826_v50 }
 0x2be   : > { %876 = vmax.xlane.f32.xlu1 %v1897_v49 }
 0x2c1   : > { %v1469_v53 = vpop.f32.mrb[28].mxu0  ;;  %870 = vmax.xlane.f32.xlu0 %v1901_v51 }
 0x2c2   : > { %v839_v54 = vpop.f32.mrb[29].mxu0  ;;  %872 = vmax.xlane.f32.xlu1 %v1903_v52  ;;  %v1912_v59 = vadd.f32 %v1469_v53, %v1316_v28 }
 0x2c3   : > { %v1907_v55 = vadd.f32 %v1316_v28, %v839_v54  ;;  %v1470_v56 = vpop.f32.mrb[30].mxu0 }
 0x2c4   : > { %v842_v57 = vpop.f32.mrb[31].mxu0  ;;  %v1915_v60 = vadd.f32 %v1470_v56, %v1316_v28 }
 0x2c5   : > { %v1909_v58 = vadd.f32 %v1316_v28, %v842_v57  ;;  %878 = vmax.xlane.f32.xlu0 %v1907_v55 }
 0x2c7   : > { %880 = vmax.xlane.f32.xlu1 %v1909_v58 }
 0x2c9   : > { %882 = vmax.xlane.f32.xlu0 %v1912_v59 }
 0x2cb   : > { %884 = vmax.xlane.f32.xlu1 %v1915_v60 }
 0x339   : > { %v859_v61 = vpop.xlane.xlu1 %858 }
 0x33a   : > { %v888_v62 = vsub.f32 %v800_v30, %v859_v61  ;;  %v855_v63 = vpop.xlane.xlu0 %854 }
 0x33b   : > { %v886_v0 = vsub.f32 %v792_v32, %v855_v63 }
 0x33c   : > { %v906_v1 = vmul.f32 1.442695, %v888_v62 }
 0x33d   : > { %v902_v2 = vmul.f32 1.442695, %v886_v0  ;;  %v861_v3 = vpop.xlane.xlu1 %860 }
 0x33e   : > { %1577 = vpow2.f32 %v906_v1  ;;  %v889_v4 = vsub.f32 %v803_v35, %v861_v3  ;;  %v857_v5 = vpop.xlane.xlu0 %856 }
 0x33f   : > { %v887_v6 = vsub.f32 %v795_v36, %v857_v5  ;;  %1579 = vpow2.f32 %v902_v2 }
 0x340   : > { %v908_v7 = vmul.f32 1.442695, %v889_v4 }
 0x341   : > { %v904_v8 = vmul.f32 1.442695, %v887_v6 }
 0x342   : > { %1581 = vpow2.f32 %v908_v7  ;;  %v867_v9 = vpop.xlane.xlu0 %866 }
 0x343   : > { %v892_v10 = vsub.f32 %v816_v38, %v867_v9  ;;  %v869_v11 = vpop.xlane.xlu1 %868  ;;  %1583 = vpow2.f32 %v904_v8 }
 0x344   : > { %v893_v12 = vsub.f32 %v819_v41, %v869_v11 }
 0x345   : > { %v914_v13 = vmul.f32 1.442695, %v892_v10 }
 0x346   : > { %v916_v14 = vmul.f32 1.442695, %v893_v12  ;;  %v863_v15 = vpop.xlane.xlu0 %862 }
 0x347   : > { %1585 = vpow2.f32 %v914_v13  ;;  %v890_v16 = vsub.f32 %v808_v43, %v863_v15  ;;  %v865_v17 = vpop.xlane.xlu1 %864 }
 0x348   : > { %v1919_v18 = vpop.eup %1577  ;;  %v891_v19 = vsub.f32 %v811_v44, %v865_v17  ;;  %1587 = vpow2.f32 %v916_v14 }
 0x349   : > { %v910_v20 = vmul.f32 1.442695, %v890_v16  ;;  %938 = vadd.xlane.f32.xlu0 %v1919_v18  ;;  %v1922_v23 = vpop.eup %1579 }
 0x34a   : > { %v912_v21 = vmul.f32 1.442695, %v891_v19  ;;  %v875_v22 = vpop.xlane.xlu0 %874 }
 0x34b   : > { %1589 = vpow2.f32 %v910_v20  ;;  %v896_v24 = vsub.f32 %v1895_v46, %v875_v22  ;;  %v877_v25 = vpop.xlane.xlu1 %876 }
 0x34c   : > { %v1925_v26 = vpop.eup %1581  ;;  %v897_v27 = vsub.f32 %v1897_v49, %v877_v25  ;;  %1591 = vpow2.f32 %v912_v21 }
 0x34d   : > { %v922_v28 = vmul.f32 1.442695, %v896_v24  ;;  %940 = vadd.xlane.f32.xlu1 %v1925_v26  ;;  %934 = vadd.xlane.f32.xlu0 %v1922_v23  ;;  %v1931_v33 = vpop.eup %1583 }
 0x34e   : > { %v924_v29 = vmul.f32 1.442695, %v897_v27  ;;  %v871_v30 = vpop.xlane.xlu0 %870 }
 0x34f   : > { %1593 = vpow2.f32 %v922_v28  ;;  %v894_v31 = vsub.f32 %v1901_v51, %v871_v30  ;;  %v873_v32 = vpop.xlane.xlu1 %872 }
 0x350   : > { %v895_v34 = vsub.f32 %v1903_v52, %v873_v32  ;;  %1595 = vpow2.f32 %v924_v29 }
 0x351   : > { %v1934_v35 = vpop.eup %1585  ;;  %v918_v36 = vmul.f32 1.442695, %v894_v31  ;;  %936 = vadd.xlane.f32.xlu1 %v1931_v33 }
 0x352   : > { %v920_v37 = vmul.f32 1.442695, %v895_v34  ;;  %946 = vadd.xlane.f32.xlu0 %v1934_v35  ;;  %v879_v38 = vpop.xlane.xlu0 %878  ;;  %v1939_v40 = vpop.eup %1587 }
 0x353   : > { %1597 = vpow2.f32 %v918_v36  ;;  %v898_v39 = vsub.f32 %v1907_v55, %v879_v38 }
 0x354   : > { %v881_v41 = vpop.xlane.xlu1 %880  ;;  %1599 = vpow2.f32 %v920_v37 }
 0x355   : > { %v1941_v42 = vpop.eup %1589  ;;  %v926_v43 = vmul.f32 1.442695, %v898_v39  ;;  %v899_v44 = vsub.f32 %v1909_v58, %v881_v41  ;;  %948 = vadd.xlane.f32.xlu1 %v1939_v40 }
 0x356   : > { %942 = vadd.xlane.f32.xlu0 %v1941_v42  ;;  %v883_v45 = vpop.xlane.xlu0 %882  ;;  %v1947_v48 = vpop.eup %1591 }
 0x357   : > { %1601 = vpow2.f32 %v926_v43  ;;  %v928_v46 = vmul.f32 1.442695, %v899_v44  ;;  %v900_v47 = vsub.f32 %v1912_v59, %v883_v45 }
 0x358   : > { %v885_v49 = vpop.xlane.xlu1 %884 }
 0x359   : > { %v1949_v50 = vpop.eup %1593  ;;  %1603 = vpow2.f32 %v928_v46  ;;  %v930_v51 = vmul.f32 1.442695, %v900_v47  ;;  %v901_v52 = vsub.f32 %v1915_v60, %v885_v49  ;;  %944 = vadd.xlane.f32.xlu1 %v1947_v48 }
 0x35a   : > { %954 = vadd.xlane.f32.xlu0 %v1949_v50  ;;  %v1954_v54 = vpop.eup %1595 }
 0x35b   : > { %1605 = vpow2.f32 %v930_v51  ;;  %v932_v53 = vmul.f32 1.442695, %v901_v52 }
 0x35d   : > { %v1956_v55 = vpop.eup %1597  ;;  %1607 = vpow2.f32 %v932_v53  ;;  %956 = vadd.xlane.f32.xlu1 %v1954_v54 }
 0x35e   : > { %950 = vadd.xlane.f32.xlu0 %v1956_v55  ;;  %v1960_v56 = vpop.eup %1599 }
 0x361   : > { %v1962_v57 = vpop.eup %1601  ;;  %952 = vadd.xlane.f32.xlu1 %v1960_v56 }
 0x362   : > { %958 = vadd.xlane.f32.xlu0 %v1962_v57 }
 0x363   : > { %v1966_v58 = vpop.eup %1603 }
 0x365   : > { %v1968_v59 = vpop.eup %1605  ;;  %960 = vadd.xlane.f32.xlu1 %v1966_v58 }
 0x366   : > { %962 = vadd.xlane.f32.xlu0 %v1968_v59 }
 0x367   : > { %v1972_v60 = vpop.eup %1607 }
 0x369   : > { %964 = vadd.xlane.f32.xlu1 %v1972_v60 }
 0x3d6   : > { %v939_v61 = vpop.xlane.xlu0 %938 }
 0x3d7   : > { %1609 = vrcp.f32 %v939_v61 }
 0x3da   : > { %v941_v62 = vpop.xlane.xlu1 %940  ;;  %v935_v63 = vpop.xlane.xlu0 %934 }
 0x3db   : > { %1611 = vrcp.f32 %v941_v62 }
 0x3dc   : > { %1613 = vrcp.f32 %v935_v63 }
 0x3de   : > { %v937_v0 = vpop.xlane.xlu1 %936 }
 0x3df   : > { %1615 = vrcp.f32 %v937_v0  ;;  %v947_v1 = vpop.xlane.xlu0 %946 }
 0x3e0   : > { %1617 = vrcp.f32 %v947_v1 }
 0x3e1   : > { %v1610_v2 = vpop.eup %1609 }
 0x3e2   : > { %v971_v3 = vmul.f32 %v1610_v2, %v1919_v18  ;;  %v949_v4 = vpop.xlane.xlu1 %948 }
 0x3e3   : > { %1619 = vrcp.f32 %v949_v4  ;;  %v943_v5 = vpop.xlane.xlu0 %942 }
 0x3e4   : > { %1000 = vst [vmem:[%s1977_s11 + $0x10] sm:$0xff] %v971_v3  ;;  %1621 = vrcp.f32 %v943_v5 }
 0x3e5   : > { %v1612_v6 = vpop.eup %1611 }
 0x3e6   : > { %v1614_v7 = vpop.eup %1613  ;;  %v973_v8 = vmul.f32 %v1612_v6, %v1925_v26  ;;  %v945_v9 = vpop.xlane.xlu1 %944 }
 0x3e7   : > { %v967_v10 = vmul.f32 %v1614_v7, %v1922_v23  ;;  %1623 = vrcp.f32 %v945_v9  ;;  %v955_v11 = vpop.xlane.xlu0 %954 }
 0x3e8   : > { %1001 = vst [vmem:[%s1977_s11 + $0x18] sm:$0xff] %v973_v8  ;;  %1625 = vrcp.f32 %v955_v11 }
 0x3e9   : > { %v1616_v12 = vpop.eup %1615  ;;  %998 = vst [vmem:[%s1977_s11] sm:$0xff] %v967_v10 }
 0x3ea   : > { %v1618_v13 = vpop.eup %1617  ;;  %v969_v14 = vmul.f32 %v1616_v12, %v1931_v33  ;;  %v957_v15 = vpop.xlane.xlu1 %956 }
 0x3eb   : > { %v979_v16 = vmul.f32 %v1618_v13, %v1934_v35  ;;  %1627 = vrcp.f32 %v957_v15  ;;  %v951_v17 = vpop.xlane.xlu0 %950 }
 0x3ec   : > { %999 = vst [vmem:[%s1977_s11 + $0x8] sm:$0xff] %v969_v14  ;;  %1629 = vrcp.f32 %v951_v17 }
 0x3ed   : > { %v1620_v18 = vpop.eup %1619  ;;  %1004 = vst [vmem:[%s1977_s11 + $0x30] sm:$0xff] %v979_v16 }
 0x3ee   : > { %v1622_v19 = vpop.eup %1621  ;;  %v981_v20 = vmul.f32 %v1620_v18, %v1939_v40  ;;  %v953_v21 = vpop.xlane.xlu1 %952 }
 0x3ef   : > { %v975_v22 = vmul.f32 %v1622_v19, %v1941_v42  ;;  %1631 = vrcp.f32 %v953_v21  ;;  %v959_v23 = vpop.xlane.xlu0 %958 }
 0x3f0   : > { %1005 = vst [vmem:[%s1977_s11 + $0x38] sm:$0xff] %v981_v20  ;;  %1633 = vrcp.f32 %v959_v23 }
 0x3f1   : > { %v1624_v24 = vpop.eup %1623  ;;  %1002 = vst [vmem:[%s1977_s11 + $0x20] sm:$0xff] %v975_v22 }
 0x3f2   : > { %v1626_v25 = vpop.eup %1625  ;;  %v977_v26 = vmul.f32 %v1624_v24, %v1947_v48  ;;  %v961_v27 = vpop.xlane.xlu1 %960 }
 0x3f3   : > { %v987_v28 = vmul.f32 %v1626_v25, %v1949_v50  ;;  %1635 = vrcp.f32 %v961_v27  ;;  %v963_v29 = vpop.xlane.xlu0 %962 }
 0x3f4   : > { %1003 = vst [vmem:[%s1977_s11 + $0x28] sm:$0xff] %v977_v26  ;;  %1637 = vrcp.f32 %v963_v29 }
 0x3f5   : > { %v1628_v30 = vpop.eup %1627  ;;  %1008 = vst [vmem:[%s1977_s11 + $0x50] sm:$0xff] %v987_v28 }
 0x3f6   : > { %v1630_v31 = vpop.eup %1629  ;;  %v989_v32 = vmul.f32 %v1628_v30, %v1954_v54  ;;  %v965_v33 = vpop.xlane.xlu1 %964 }
 0x3f7   : > { %v983_v34 = vmul.f32 %v1630_v31, %v1956_v55  ;;  %1639 = vrcp.f32 %v965_v33 }
 0x3f8   : > { %1009 = vst [vmem:[%s1977_s11 + $0x58] sm:$0xff] %v989_v32 }
 0x3f9   : > { %v1632_v35 = vpop.eup %1631  ;;  %1006 = vst [vmem:[%s1977_s11 + $0x40] sm:$0xff] %v983_v34 }
 0x3fa   : > { %v1634_v36 = vpop.eup %1633  ;;  %v985_v37 = vmul.f32 %v1632_v35, %v1960_v56 }
 0x3fb   : > { %v991_v38 = vmul.f32 %v1634_v36, %v1962_v57 }
 0x3fc   : > { %1007 = vst [vmem:[%s1977_s11 + $0x48] sm:$0xff] %v985_v37 }
 0x3fd   : > { %v1636_v39 = vpop.eup %1635  ;;  %1010 = vst [vmem:[%s1977_s11 + $0x60] sm:$0xff] %v991_v38 }
 0x3fe   : > { %v1638_v40 = vpop.eup %1637  ;;  %v993_v41 = vmul.f32 %v1636_v39, %v1966_v58  ;;  %1020 = sbr.rel (!%p1794_p4) target bundleno = 1078 (0x436), region = 52 }
 0x3ff   : > { %v995_v42 = vmul.f32 %v1638_v40, %v1968_v59 }
 0x400   : > { %1011 = vst [vmem:[%s1977_s11 + $0x68] sm:$0xff] %v993_v41 }
 0x401   : > { %v1640_v43 = vpop.eup %1639  ;;  %1012 = vst [vmem:[%s1977_s11 + $0x70] sm:$0xff] %v995_v42 }
 0x402   : > { %v997_v44 = vmul.f32 %v1640_v43, %v1972_v60 }
 0x404   : > { %1013 = vst [vmem:[%s1977_s11 + $0x78] sm:$0xff] %v997_v44 }
 0x405   : > { %s2126_s24 = smov (!%p1023_p8, %s1022_s24), 16 }
 0x406   : > { %s1327_s17 = sshll.u32 %s2126_s24, 7 }
 0x407   : > { %p1330_p9 = scmp.eq.s32.totalorder %s1327_s17, 0 }
 0x408   : > { %s2023_s18 = sshrl.u32 (!%p1330_p9), %s2126_s24, 4 }
 0x409   : > { %1031 = sbr.rel (%p1330_p9) target bundleno = 1078 (0x436), region = 56  ;;  %p1331_p10 = scmp.le.s32.totalorder (!%p1330_p9), %s2023_s18, 0 }
 0x410   : > { %1245 = sbr.rel (%p1331_p10) target bundleno = 1057 (0x421), region = 132  ;;  %s2119_s27 = smov (!%p1331_p10), %s2017_s16 }
 0x411   : > { %s2120_s9 = smov (!%p1331_p10), %s1977_s11  ;;  %s2032_s12 = smov (!%p1331_p10), 0  }
 0x412   : > { %s2034_s19 = smov (!%p1331_p10), 0  }
 0x417 LB: >> { %v1123_v45 = vld [vmem:[%s1703_s9] sm:$0xff]  ;;  %v1125_v46 = vld [vmem:[%s1703_s9 + $0x8] sm:$0xff]  ;;  %v1127_v47 = vld [vmem:[%s1703_s9 + $0x10] sm:$0xff]  ;;  %s1155_s20 = sadd.s32 1, %s1707_s12  ;;  %s1117_s19 = sadd.s32 1, %s1711_s19   ;;  %s1711_s19 = sphi %s2034_s19, %s1117_s19   ;;  %s1707_s12 = sphi %s2032_s12, %s2121_s12   ;;  %s1703_s9 = sphi %s2120_s9, %s1160_s9   ;;  %s1699_s27 = sphi %s2119_s27, %s1161_s27  }
 0x418   : >> { %1124 = vst [vmem:[%s1699_s27] sm:$0xff] %v1123_v45  ;;  %1126 = vst [vmem:[%s1699_s27 + $0x8] sm:$0xff] %v1125_v46  ;;  %v1129_v48 = vld [vmem:[%s1703_s9 + $0x18] sm:$0xff]  ;;  %v1131_v49 = vld [vmem:[%s1703_s9 + $0x20] sm:$0xff]  ;;  %p1156_p11 = scmp.ge.s32.totalorder %s1155_s20, %s2023_s18  ;;  %p1116_p12 = scmp.ge.s32.totalorder %s1117_s19, %s2023_s18 }
 0x419   : >> { %1128 = vst [vmem:[%s1699_s27 + $0x10] sm:$0xff] %v1127_v47  ;;  %v1133_v50 = vld [vmem:[%s1703_s9 + $0x28] sm:$0xff]  ;;  %1130 = vst [vmem:[%s1699_s27 + $0x18] sm:$0xff] %v1129_v48  ;;  %v1135_v51 = vld [vmem:[%s1703_s9 + $0x30] sm:$0xff] }
 0x41a   : >> { %1132 = vst [vmem:[%s1699_s27 + $0x20] sm:$0xff] %v1131_v49  ;;  %1134 = vst [vmem:[%s1699_s27 + $0x28] sm:$0xff] %v1133_v50  ;;  %v1137_v52 = vld [vmem:[%s1703_s9 + $0x38] sm:$0xff]  ;;  %v1139_v53 = vld [vmem:[%s1703_s9 + $0x40] sm:$0xff]  ;;  %s2128_s20 = smov (%p1156_p11, %s1155_s20), 0  ;;  %1119 = sbr.rel (!%p1116_p12) target bundleno = 1047 (0x417), region = 138 }
 0x41b   : >> { %1136 = vst [vmem:[%s1699_s27 + $0x30] sm:$0xff] %v1135_v51  ;;  %1138 = vst [vmem:[%s1699_s27 + $0x38] sm:$0xff] %v1137_v52  ;;  %v1141_v54 = vld [vmem:[%s1703_s9 + $0x48] sm:$0xff]  ;;  %v1143_v55 = vld [vmem:[%s1703_s9 + $0x50] sm:$0xff]  ;;  %s1332_s21 = sshll.u32 %s2128_s20, 7  ;;  %s2121_s12 = smov %s2128_s20 }
 0x41c   : >> { %1140 = vst [vmem:[%s1699_s27 + $0x40] sm:$0xff] %v1139_v53  ;;  %v1145_v56 = vld [vmem:[%s1703_s9 + $0x58] sm:$0xff]  ;;  %1142 = vst [vmem:[%s1699_s27 + $0x48] sm:$0xff] %v1141_v54  ;;  %v1147_v57 = vld [vmem:[%s1703_s9 + $0x60] sm:$0xff] }
 0x41d   : >> { %1144 = vst [vmem:[%s1699_s27 + $0x50] sm:$0xff] %v1143_v55  ;;  %1146 = vst [vmem:[%s1699_s27 + $0x58] sm:$0xff] %v1145_v56  ;;  %v1149_v58 = vld [vmem:[%s1703_s9 + $0x68] sm:$0xff]  ;;  %v1151_v59 = vld [vmem:[%s1703_s9 + $0x70] sm:$0xff] }
 0x41e   : >> { %1148 = vst [vmem:[%s1699_s27 + $0x60] sm:$0xff] %v1147_v57  ;;  %1150 = vst [vmem:[%s1699_s27 + $0x68] sm:$0xff] %v1149_v58  ;;  %v1153_v60 = vld [vmem:[%s1703_s9 + $0x78] sm:$0xff]  ;;  %s1160_s9 = scalar_lea.vmem %s1977_s11, %s1332_s21 [#allocation2]  }
 0x41f   : >> { %1152 = vst [vmem:[%s1699_s27 + $0x70] sm:$0xff] %v1151_v59  ;;  %1154 = vst [vmem:[%s1699_s27 + $0x78] sm:$0xff] %v1153_v60  ;;  %s1161_s27 = scalar_lea.vmem %s2017_s16, %s1332_s21  }
 0x421 PF: > { %s2092_s22 = sand.u32 15, %s2126_s24   ;;  %s1343_s23 = sshll.u32 %s2023_s18, 7 }
 0x422   : > { %s1166_s26 = scalar_lea.vmem %s1977_s11, %s1343_s23 [#allocation2]   ;;  %s1168_s29 = scalar_lea.vmem %s2017_s16, %s1343_s23  }
 0x423   : > { %p1337_p13 = scmp.le.s32.totalorder %s2092_s22, 0 }
 0x424   : > { %s1713_s30 = smov (!%p1337_p13), %s1168_s29   ;;  %s1717_s10 = smov (!%p1337_p13), %s1166_s26  }
 0x425   : > { %1259 = sbr.rel (%p1337_p13) target bundleno = 1078 (0x436), region = 143  ;;  %s1721_s13 = smov (!%p1337_p13), 0  }
 0x426   : > { %s1725_s14 = smov (!%p1337_p13), 0  }
 0x42c LB: >> { %v1178_v61 = vld [vmem:[%s1719_s10] sm:$0xff]  ;;  %s1180_s24 = sadd.s32 1, %s1723_s13  ;;  %s1172_s14 = sadd.s32 1, %s1727_s14   ;;  %s1727_s14 = sphi %s1725_s14, %s1172_s14   ;;  %s1723_s13 = sphi %s1721_s13, %s1722_s13   ;;  %s1719_s10 = sphi %s1717_s10, %s1185_s10   ;;  %s1715_s30 = sphi %s1713_s30, %s1186_s30  }
 0x42d   : >> { %1179 = vst [vmem:[%s1715_s30] sm:$0xff] %v1178_v61  ;;  %p1181_p0 = scmp.ge.s32.totalorder %s1180_s24, %s2092_s22  ;;  %p1171_p1 = scmp.ge.s32.totalorder %s1172_s14, %s2092_s22 }
 0x42f   : >> { %s2130_s24 = smov (%p1181_p0, %s1180_s24), 0  ;;  %1174 = sbr.rel (!%p1171_p1) target bundleno = 1068 (0x42c), region = 149 }
 0x430   : >> { %s1338_s11 = sshll.u32 %s2130_s24, 3  ;;  %s1722_s13 = smov %s2130_s24  }
 0x431   : >> { %s1185_s10 = scalar_lea.vmem %s1166_s26, %s1338_s11 [#allocation2]   ;;  %s1186_s30 = scalar_lea.vmem %s1168_s29, %s1338_s11  }
 0x436 PF: > { %p14_p2 = scmp.ge.s32.totalorder %s1784_s28, 4   ;;  %s2122_s24 = smov %s1691_s25 }
 0x437   : > { %s2123_s25 = smov %s1792_s8  ;;  %s2124_s26 = smov %s1784_s28 }
 0x438   :  { %16 = sbr.rel (!%p14_p2) target bundleno = 2 (0x2), region = 160 }

</bundles_post_ra>
